<compile_context>
chip_gen: v6e
topology: v6e:2x2x1
jax: 0.10.0
libtpu: 0.0.40
codegen_flags: <defaults>
</compile_context>

<pallas_src>
from functools import partial

import jax
import jax.numpy as jnp
from jax.experimental import pallas as pl
from jax.experimental.pallas import tpu as pltpu


def _round_up(n: int, m: int) -> int:
    return ((n + m - 1) // m) * m


def mlp_kernel(x_ref, w1_ref, b1_ref, w2_ref, b2_ref, o_ref):
    # fc1: [BM, In] @ [In, Hp] -> f32 accumulate, + bias, ReLU (all f32).
    h = jnp.dot(x_ref[...], w1_ref[...], preferred_element_type=jnp.float32)
    h = jnp.maximum(h + b1_ref[...], 0.0)
    # fc2: cast activations to the weight compute dtype (no-op for f32),
    # accumulate in f32, + bias.
    y = jnp.dot(h.astype(w2_ref.dtype), w2_ref[...],
                preferred_element_type=jnp.float32)
    y = y + b2_ref[...]
    # Sigmoid epilogue: exp and approximate reciprocal both land on the EUP.
    o_ref[...] = pl.reciprocal(1.0 + jnp.exp(-y), approx=True).astype(o_ref.dtype)


def prepare_params(w1, b1, w2, b2, *, compute_dtype=jnp.float32, lane=128):
    """One-time prep (outside the hot path).

    - Transpose PyTorch-layout weights to [in, out].
    - Zero-pad ONLY the hidden lane dim up to a multiple of 128 (padded hidden
      units stay exactly 0 through ReLU and contribute nothing to fc2).
    - Cast weights to `compute_dtype` (bf16 on v6e/v7x for MXU throughput);
      biases stay f32 because they are added in the f32 epilogue.
    The output dim is intentionally NOT padded: the kernel stores an un-padded
    [BM, output_size] tile, cutting HBM writeback ~8x for output_size=16.
    """
    H, In = w1.shape
    Out = w2.shape[0]
    Hp = _round_up(H, lane)
    w1p = jnp.zeros((In, Hp), compute_dtype).at[:, :H].set(w1.T.astype(compute_dtype))
    b1p = jnp.zeros((1, Hp), jnp.float32).at[:, :H].set(b1.astype(jnp.float32))
    w2p = jnp.zeros((Hp, Out), compute_dtype).at[:H, :].set(w2.T.astype(compute_dtype))
    b2p = b2.astype(jnp.float32).reshape(1, Out)
    return w1p, b1p, w2p, b2p


@partial(jax.jit, static_argnames=("block_m",))
def mlp_forward(x, w1p, b1p, w2p, b2p, *, block_m=512):
    """x: [B, In]. Padded/transposed params from prepare_params.

    Returns [B, output_size] float32.
    """
    B, In = x.shape
    Hp = w1p.shape[1]
    Out = w2p.shape[1]

    # Stream x in the weight compute dtype (halves DMA bytes when bf16).
    x = x.astype(w1p.dtype)

    # Batch tile: multiple of 16 sublanes (bf16 (16,128) tile friendly),
    # capped at block_m rows.  For small batches this is a single grid step.
    BM = min(block_m, _round_up(B, 16))
    B_pad = _round_up(B, BM)
    if B_pad != B:
        x = jnp.pad(x, ((0, B_pad - B), (0, 0)))

    grid = (B_pad // BM,)

    out = pl.pallas_call(
        mlp_kernel,
        out_shape=jax.ShapeDtypeStruct((B_pad, Out), jnp.float32),
        grid_spec=pltpu.PrefetchScalarGridSpec(
            num_scalar_prefetch=0,
            grid=grid,
            in_specs=[
                pl.BlockSpec((BM, In), lambda i: (i, 0)),   # x: streamed per step
                pl.BlockSpec((In, Hp), lambda i: (0, 0)),   # w1: VMEM-resident
                pl.BlockSpec((1, Hp), lambda i: (0, 0)),    # b1: VMEM-resident
                pl.BlockSpec((Hp, Out), lambda i: (0, 0)),  # w2: VMEM-resident
                pl.BlockSpec((1, Out), lambda i: (0, 0)),   # b2: VMEM-resident
            ],
            # Un-padded output width: block last dim == full array dim (legal),
            # so no zero-padding is ever written back to HBM.
            out_specs=pl.BlockSpec((BM, Out), lambda i: (i, 0)),
        ),
        compiler_params=pltpu.CompilerParams(
            dimension_semantics=("parallel",),
        ),
    )(x, w1p, b1p, w2p, b2p)

    if B_pad != B:
        out = out[:B]
    return out


if __name__ == "__main__":
    # Shapes implied by the module: input_size=32, hidden_size=64, output_size=16.
    # Batch of 256 -> a single grid step with the raised block_m default.
    batch, input_size, hidden_size, output_size = 256, 32, 64, 16

    key = jax.random.PRNGKey(0)
    kx, kw1, kb1, kw2, kb2 = jax.random.split(key, 5)

    x = jax.random.normal(kx, (batch, input_size), dtype=jnp.float32)
    # Deterministic parameter init (PyTorch nn.Linear-style uniform bounds).
    w1 = jax.random.uniform(kw1, (hidden_size, input_size), jnp.float32,
                            -1.0 / jnp.sqrt(input_size), 1.0 / jnp.sqrt(input_size))
    b1 = jax.random.uniform(kb1, (hidden_size,), jnp.float32,
                            -1.0 / jnp.sqrt(input_size), 1.0 / jnp.sqrt(input_size))
    w2 = jax.random.uniform(kw2, (output_size, hidden_size), jnp.float32,
                            -1.0 / jnp.sqrt(hidden_size), 1.0 / jnp.sqrt(hidden_size))
    b2 = jax.random.uniform(kb2, (output_size,), jnp.float32,
                            -1.0 / jnp.sqrt(hidden_size), 1.0 / jnp.sqrt(hidden_size))

    # Pure-JAX reference.
    ref = jax.nn.sigmoid(jnp.maximum(x @ w1.T + b1, 0.0) @ w2.T + b2)

    # --- f32 compute path (exact MXU inputs, tight tolerance) ---------------
    params_f32 = prepare_params(w1, b1, w2, b2, compute_dtype=jnp.float32)
    out_f32 = mlp_forward(x, *params_f32)
    jax.block_until_ready(out_f32)
    assert out_f32.shape == (batch, output_size)
    err_f32 = float(jnp.max(jnp.abs(out_f32 - ref)))
    assert err_f32 < 2e-3, f"f32 path max abs error {err_f32}"

    # --- bf16 MXU-input path (v6e/v7x throughput), f32 accumulate/epilogue --
    params_bf16 = prepare_params(w1, b1, w2, b2, compute_dtype=jnp.bfloat16)
    out_bf16 = mlp_forward(x, *params_bf16)
    jax.block_until_ready(out_bf16)
    assert out_bf16.shape == (batch, output_size)
    err_bf16 = float(jnp.max(jnp.abs(out_bf16 - ref)))
    assert err_bf16 < 2e-2, f"bf16 path max abs error {err_bf16}"

    print("KERNEL_OK")
</pallas_src>

<mosaic_0001>
module attributes {stable_mosaic.version = 11 : i64} {
  func.func @mlp_kernel(%arg0: i32, %arg1: memref<256x32xf32, #tpu.memory_space<vmem>>, %arg2: memref<32x128xf32, #tpu.memory_space<vmem>>, %arg3: memref<1x128xf32, #tpu.memory_space<vmem>>, %arg4: memref<128x16xf32, #tpu.memory_space<vmem>>, %arg5: memref<1x16xf32, #tpu.memory_space<vmem>>, %arg6: memref<256x16xf32, #tpu.memory_space<vmem>>) attributes {dimension_semantics = [#tpu.dimension_semantics<parallel>], iteration_bounds = array<i64: 1>, scalar_prefetch = 0 : i64, scratch_operands = 0 : i64, tpu.core_type = #tpu.core_type<tc>, window_params = [{transform_indices = @transform_0, window_bounds = array<i64: 256, 32>}, {pipeline_mode = #tpu.pipeline_mode<synchronous>, transform_indices = @transform_1, window_bounds = array<i64: 32, 128>}, {pipeline_mode = #tpu.pipeline_mode<synchronous>, transform_indices = @transform_2, window_bounds = array<i64: 1, 128>}, {pipeline_mode = #tpu.pipeline_mode<synchronous>, transform_indices = @transform_3, window_bounds = array<i64: 128, 16>}, {pipeline_mode = #tpu.pipeline_mode<synchronous>, transform_indices = @transform_4, window_bounds = array<i64: 1, 16>}, {transform_indices = @transform_5, window_bounds = array<i64: 256, 16>}]} {
    %c0 = arith.constant 0 : index
    %c0_0 = arith.constant 0 : index
    %0 = vector.load %arg1[%c0, %c0_0] : memref<256x32xf32, #tpu.memory_space<vmem>>, vector<256x32xf32>
    %c0_1 = arith.constant 0 : index
    %c0_2 = arith.constant 0 : index
    %1 = vector.load %arg2[%c0_1, %c0_2] : memref<32x128xf32, #tpu.memory_space<vmem>>, vector<32x128xf32>
    %cst = arith.constant dense<0.000000e+00> : vector<256x128xf32>
    %2 = tpu.matmul %0, %1, %cst {dimension_numbers = #tpu.dot_dimension_numbers<[1], [0], [0], [1], [0, 0, 1, 1], [], []>} : vector<256x32xf32>, vector<32x128xf32>, vector<256x128xf32> -> vector<256x128xf32>
    %c0_3 = arith.constant 0 : index
    %c0_4 = arith.constant 0 : index
    %3 = vector.load %arg3[%c0_3, %c0_4] : memref<1x128xf32, #tpu.memory_space<vmem>>, vector<1x128xf32>
    %4 = vector.broadcast %3 : vector<1x128xf32> to vector<256x128xf32>
    %5 = arith.addf %2, %4 : vector<256x128xf32>
    %cst_5 = arith.constant 0.000000e+00 : f32
    %6 = vector.broadcast %cst_5 : f32 to vector<256x128xf32>
    %7 = arith.maximumf %5, %6 : vector<256x128xf32>
    %c0_6 = arith.constant 0 : index
    %c0_7 = arith.constant 0 : index
    %8 = vector.load %arg4[%c0_6, %c0_7] : memref<128x16xf32, #tpu.memory_space<vmem>>, vector<128x16xf32>
    %cst_8 = arith.constant dense<0.000000e+00> : vector<256x16xf32>
    %9 = tpu.matmul %7, %8, %cst_8 {dimension_numbers = #tpu.dot_dimension_numbers<[1], [0], [0], [1], [0, 0, 1, 1], [], []>} : vector<256x128xf32>, vector<128x16xf32>, vector<256x16xf32> -> vector<256x16xf32>
    %c0_9 = arith.constant 0 : index
    %c0_10 = arith.constant 0 : index
    %10 = vector.load %arg5[%c0_9, %c0_10] : memref<1x16xf32, #tpu.memory_space<vmem>>, vector<1x16xf32>
    %11 = vector.broadcast %10 : vector<1x16xf32> to vector<256x16xf32>
    %12 = arith.addf %9, %11 : vector<256x16xf32>
    %cst_11 = arith.constant 0.000000e+00 : f32
    %13 = vector.broadcast %cst_11 : f32 to vector<256x16xf32>
    %14 = arith.subf %13, %12 : vector<256x16xf32>
    %15 = math.exp %14 : vector<256x16xf32>
    %cst_12 = arith.constant 1.000000e+00 : f32
    %16 = vector.broadcast %cst_12 : f32 to vector<256x16xf32>
    %17 = arith.addf %16, %15 : vector<256x16xf32>
    %18 = tpu.reciprocal %17 {approx = true} : vector<256x16xf32> -> vector<256x16xf32>
    %c0_13 = arith.constant 0 : index
    %c0_14 = arith.constant 0 : index
    %19 = vector.load %arg6[%c0_13, %c0_14] : memref<256x16xf32, #tpu.memory_space<vmem>>, vector<256x16xf32>
    tpu.vector_store %arg6[%c0_13, %c0_14], %18 {strides = array<i32>} : memref<256x16xf32, #tpu.memory_space<vmem>>, vector<256x16xf32>,
    return
  }
  func.func @transform_0(%arg0: i32) -> (i32, i32) {
    %c0_i32 = arith.constant 0 : i32
    %c0_i32_0 = arith.constant 0 : i32
    return %arg0, %c0_i32 : i32, i32
  }
  func.func @transform_1(%arg0: i32) -> (i32, i32) {
    %c0_i32 = arith.constant 0 : i32
    %c0_i32_0 = arith.constant 0 : i32
    %c0_i32_1 = arith.constant 0 : i32
    return %c0_i32, %c0_i32_0 : i32, i32
  }
  func.func @transform_2(%arg0: i32) -> (i32, i32) {
    %c0_i32 = arith.constant 0 : i32
    %c0_i32_0 = arith.constant 0 : i32
    %c0_i32_1 = arith.constant 0 : i32
    return %c0_i32, %c0_i32_0 : i32, i32
  }
  func.func @transform_3(%arg0: i32) -> (i32, i32) {
    %c0_i32 = arith.constant 0 : i32
    %c0_i32_0 = arith.constant 0 : i32
    %c0_i32_1 = arith.constant 0 : i32
    return %c0_i32, %c0_i32_0 : i32, i32
  }
  func.func @transform_4(%arg0: i32) -> (i32, i32) {
    %c0_i32 = arith.constant 0 : i32
    %c0_i32_0 = arith.constant 0 : i32
    %c0_i32_1 = arith.constant 0 : i32
    return %c0_i32, %c0_i32_0 : i32, i32
  }
  func.func @transform_5(%arg0: i32) -> (i32, i32) {
    %c0_i32 = arith.constant 0 : i32
    %c0_i32_0 = arith.constant 0 : i32
    return %arg0, %c0_i32 : i32, i32
  }
}

</mosaic_0001>

<bundles_post_ra>
// kernel: mlp_forward.1
= control target key start
LH: loop header
LB: loop body
LE: loop exit
PB: predicated region body
PF: predicated region fallthrough
CT: control target
= control target key end

     0   :  { %vm63_vm0 = vcmask 261120   ;;  %vm825_vm1 = vcmask 130048   ;;  %s1696_s1 = inlined_call_operand.vmem [shape: f32[32,128], index: 1, kind: input, shape index: {}]   ;;  %s1697_s0 = inlined_call_operand.vmem [shape: f32[256,32], index: 0, kind: input, shape index: {}]   ;;  %s1698_s3 = inlined_call_operand.vmem [shape: f32[128,16], index: 3, kind: input, shape index: {}]   ;;  %s1699_s2 = inlined_call_operand.vmem [shape: f32[1,128], index: 2, kind: input, shape index: {}]   ;;  %s1700_s4 = inlined_call_operand.vmem [shape: f32[1,16], index: 4, kind: input, shape index: {}]   ;;  %s1701_s5 = inlined_call_operand.vmem [shape: f32[256,16], index: 5, kind: output, shape index: {}]  }
   0x1   :  { %v55_v0 = vld [vmem:[%s1696_s1 + $0x18] sm:$0xff]  ;;  %v54_v1 = vld [vmem:[%s1696_s1 + $0x10] sm:$0xff]  ;;  %v20_v2 = vld [vmem:[%s1697_s0] sm:$0xff] }
   0x2   :  { %980 = vmatprep.subr.mxu0 %v55_v0  ;;  %v53_v3 = vld [vmem:[%s1696_s1 + $0x8] sm:$0xff]  ;;  %988 = vmatprep.mubr.msk.f32.mxu0 %vm63_vm0, %v20_v2  ;;  %v52_v4 = vld [vmem:[%s1696_s1] sm:$0xff]  ;;  %v22_v6 = vld [vmem:[%s1697_s0 + $0x10] sm:$0xff] }
   0x3   :  { %981 = vmatpush3.msra.mxu0 %v55_v0  ;;  %v21_v5 = vld [vmem:[%s1697_s0 + $0x8] sm:$0xff]  ;;  %v23_v7 = vld [vmem:[%s1697_s0 + $0x18] sm:$0xff]  ;;  %v24_v8 = vld [vmem:[%s1697_s0 + $0x20] sm:$0xff] }
   0x4   :  { %982 = vmatprep.subr.mxu0 %v54_v1  ;;  %v432_v9 = vld [vmem:[%s1698_s3 + $0x78] sm:$0xff]  ;;  %v431_v10 = vld [vmem:[%s1698_s3 + $0x70] sm:$0xff]  ;;  %v25_v11 = vld [vmem:[%s1697_s0 + $0x28] sm:$0xff] }
   0x5   :  { %983 = vmatpush3.msra.mxu0 %v54_v1  ;;  %v430_v12 = vld [vmem:[%s1698_s3 + $0x68] sm:$0xff]  ;;  %v26_v13 = vld [vmem:[%s1697_s0 + $0x30] sm:$0xff]  ;;  %1116 = vmatprep.subr.mxu1 %v432_v9  ;;  %v429_v14 = vld [vmem:[%s1698_s3 + $0x60] sm:$0xff] }
   0x6   :  { %984 = vmatprep.subr.mxu0 %v53_v3  ;;  %1132 = vmatpush3.msra.mxu1 %v432_v9  ;;  %v27_v15 = vld [vmem:[%s1697_s0 + $0x38] sm:$0xff]  ;;  %v28_v17 = vld [vmem:[%s1697_s0 + $0x40] sm:$0xff]  ;;  %v427_v18 = vld [vmem:[%s1698_s3 + $0x50] sm:$0xff] }
   0x7   :  { %985 = vmatpush3.msra.mxu0 %v53_v3  ;;  %v428_v16 = vld [vmem:[%s1698_s3 + $0x58] sm:$0xff]  ;;  %1117 = vmatprep.subr.mxu1 %v431_v10  ;;  %v29_v19 = vld [vmem:[%s1697_s0 + $0x48] sm:$0xff]  ;;  %v30_v21 = vld [vmem:[%s1697_s0 + $0x50] sm:$0xff] }
   0x8   :  { %986 = vmatprep.subr.mxu0 %v52_v4  ;;  %1133 = vmatpush3.msra.mxu1 %v431_v10  ;;  %v426_v20 = vld [vmem:[%s1698_s3 + $0x48] sm:$0xff]  ;;  %v425_v22 = vld [vmem:[%s1698_s3 + $0x40] sm:$0xff]  ;;  %v31_v23 = vld [vmem:[%s1697_s0 + $0x58] sm:$0xff] }
   0x9   :  { %987 = vmatpush3.msra.mxu0 %v52_v4  ;;  %1118 = vmatprep.subr.mxu1 %v430_v12  ;;  %v424_v24 = vld [vmem:[%s1698_s3 + $0x38] sm:$0xff]  ;;  %v32_v25 = vld [vmem:[%s1697_s0 + $0x60] sm:$0xff]  ;;  %v423_v26 = vld [vmem:[%s1698_s3 + $0x30] sm:$0xff] }
   0xa   :  { %989 = vmatmul.mubr.msk.f32.vlgmr.msra.gmra.mxu0 %vm63_vm0, %v21_v5  ;;  %1036 = vmatprep.subr.mxu0 %v432_v9  ;;  %v33_v27 = vld [vmem:[%s1697_s0 + $0x68] sm:$0xff]  ;;  %v34_v29 = vld [vmem:[%s1697_s0 + $0x70] sm:$0xff]  ;;  %v421_v30 = vld [vmem:[%s1698_s3 + $0x20] sm:$0xff] }
   0xb   :  { %991 = vmatprep.mubr.msk.f32.mxu0 %vm63_vm0, %v22_v6  ;;  %1037 = vmatpush3.msra.mxu0 %v432_v9  ;;  %v422_v28 = vld [vmem:[%s1698_s3 + $0x28] sm:$0xff]  ;;  %v35_v31 = vld [vmem:[%s1697_s0 + $0x78] sm:$0xff]  ;;  %v36_v32 = vld [vmem:[%s1697_s0 + $0x80] sm:$0xff] }
   0xc   :  { %1038 = vmatprep.subr.mxu0 %v431_v10  ;;  %1134 = vmatpush3.msra.mxu1 %v430_v12  ;;  %v37_v33 = vld [vmem:[%s1697_s0 + $0x88] sm:$0xff]  ;;  %v38_v34 = vld [vmem:[%s1697_s0 + $0x90] sm:$0xff]  ;;  %v39_v35 = vld [vmem:[%s1697_s0 + $0x98] sm:$0xff] }
   0xd   :  { %1039 = vmatpush3.msra.mxu0 %v431_v10  ;;  %1119 = vmatprep.subr.mxu1 %v429_v14  ;;  %v40_v36 = vld [vmem:[%s1697_s0 + $0xa0] sm:$0xff]  ;;  %v41_v37 = vld [vmem:[%s1697_s0 + $0xa8] sm:$0xff]  ;;  %v42_v38 = vld [vmem:[%s1697_s0 + $0xb0] sm:$0xff] }
   0xe   :  { %992 = vmatmul.mubr.msk.f32.gmra.mxu0 %vm63_vm0, %v23_v7  ;;  %1040 = vmatprep.subr.mxu0 %v430_v12  ;;  %v43_v39 = vld [vmem:[%s1697_s0 + $0xb8] sm:$0xff]  ;;  %v44_v40 = vld [vmem:[%s1697_s0 + $0xc0] sm:$0xff]  ;;  %v45_v41 = vld [vmem:[%s1697_s0 + $0xc8] sm:$0xff] }
   0xf   :  { %994 = vmatprep.mubr.msk.f32.mxu0 %vm63_vm0, %v24_v8  ;;  %1041 = vmatpush3.msra.mxu0 %v430_v12  ;;  %v46_v42 = vld [vmem:[%s1697_s0 + $0xd0] sm:$0xff]  ;;  %v47_v43 = vld [vmem:[%s1697_s0 + $0xd8] sm:$0xff]  ;;  %v48_v44 = vld [vmem:[%s1697_s0 + $0xe0] sm:$0xff] }
  0x10   :  { %1042 = vmatprep.subr.mxu0 %v429_v14  ;;  %1135 = vmatpush3.msra.mxu1 %v429_v14  ;;  %v49_v45 = vld [vmem:[%s1697_s0 + $0xe8] sm:$0xff]  ;;  %v50_v46 = vld [vmem:[%s1697_s0 + $0xf0] sm:$0xff]  ;;  %v51_v47 = vld [vmem:[%s1697_s0 + $0xf8] sm:$0xff] }
  0x11   :  { %1043 = vmatpush3.msra.mxu0 %v429_v14  ;;  %1120 = vmatprep.subr.mxu1 %v428_v16  ;;  %v420_v48 = vld [vmem:[%s1698_s3 + $0x18] sm:$0xff]  ;;  %v419_v49 = vld [vmem:[%s1698_s3 + $0x10] sm:$0xff]  ;;  %v418_v50 = vld [vmem:[%s1698_s3 + $0x8] sm:$0xff] }
  0x12   :  { %995 = vmatmul.mubr.msk.f32.gmra.mxu0 %vm63_vm0, %v25_v11  ;;  %1044 = vmatprep.subr.mxu0 %v428_v16  ;;  %v417_v51 = vld [vmem:[%s1698_s3] sm:$0xff] }
  0x13   :  { %997 = vmatprep.mubr.msk.f32.mxu0 %vm63_vm0, %v26_v13  ;;  %1045 = vmatpush3.msra.mxu0 %v428_v16  ;;  %v1497_v52 = vld [vmem:[%s1699_s2] ss:$0 sm:$0xff] }
  0x14   :  { %1046 = vmatprep.subr.mxu0 %v427_v18  ;;  %1136 = vmatpush3.msra.mxu1 %v428_v16 }
  0x15   :  { %1047 = vmatpush3.msra.mxu0 %v427_v18  ;;  %1121 = vmatprep.subr.mxu1 %v427_v18 }
  0x16   :  { %998 = vmatmul.mubr.msk.f32.gmra.mxu0 %vm63_vm0, %v27_v15  ;;  %1048 = vmatprep.subr.mxu0 %v426_v20 }
  0x17   :  { %1000 = vmatprep.mubr.msk.f32.mxu0 %vm63_vm0, %v28_v17  ;;  %1049 = vmatpush3.msra.mxu0 %v426_v20 }
  0x18   :  { %1050 = vmatprep.subr.mxu0 %v425_v22  ;;  %1137 = vmatpush3.msra.mxu1 %v427_v18 }
  0x19   :  { %1051 = vmatpush3.msra.mxu0 %v425_v22  ;;  %1122 = vmatprep.subr.mxu1 %v426_v20 }
  0x1a   :  { %1001 = vmatmul.mubr.msk.f32.gmra.mxu0 %vm63_vm0, %v29_v19  ;;  %1052 = vmatprep.subr.mxu0 %v424_v24 }
  0x1b   :  { %1003 = vmatprep.mubr.msk.f32.mxu0 %vm63_vm0, %v30_v21  ;;  %1053 = vmatpush3.msra.mxu0 %v424_v24 }
  0x1c   :  { %1054 = vmatprep.subr.mxu0 %v423_v26  ;;  %1138 = vmatpush3.msra.mxu1 %v426_v20 }
  0x1d   :  { %1055 = vmatpush3.msra.mxu0 %v423_v26  ;;  %1123 = vmatprep.subr.mxu1 %v425_v22 }
  0x1e   :  { %1004 = vmatmul.mubr.msk.f32.gmra.mxu0 %vm63_vm0, %v31_v23  ;;  %1056 = vmatprep.subr.mxu0 %v422_v28 }
  0x1f   :  { %1006 = vmatprep.mubr.msk.f32.mxu0 %vm63_vm0, %v32_v25  ;;  %1057 = vmatpush3.msra.mxu0 %v422_v28 }
  0x20   :  { %1058 = vmatprep.subr.mxu0 %v421_v30  ;;  %1139 = vmatpush3.msra.mxu1 %v425_v22 }
  0x21   :  { %1059 = vmatpush3.msra.mxu0 %v421_v30  ;;  %1124 = vmatprep.subr.mxu1 %v424_v24 }
  0x22   :  { %1007 = vmatmul.mubr.msk.f32.gmra.mxu0 %vm63_vm0, %v33_v27  ;;  %1140 = vmatpush3.msra.mxu1 %v424_v24 }
  0x23   :  { %1009 = vmatprep.mubr.msk.f32.mxu0 %vm63_vm0, %v34_v29  ;;  %1125 = vmatprep.subr.mxu1 %v423_v26 }
  0x24   :  { %1141 = vmatpush3.msra.mxu1 %v423_v26  ;;  %1060 = vmatprep.subr.mxu0 %v420_v48 }
  0x25   :  { %1126 = vmatprep.subr.mxu1 %v422_v28  ;;  %1061 = vmatpush3.msra.mxu0 %v420_v48 }
  0x26   :  { %1010 = vmatmul.mubr.msk.f32.gmra.mxu0 %vm63_vm0, %v35_v31  ;;  %1142 = vmatpush3.msra.mxu1 %v422_v28 }
  0x27   :  { %1012 = vmatprep.mubr.msk.f32.mxu0 %vm63_vm0, %v36_v32  ;;  %1127 = vmatprep.subr.mxu1 %v421_v30 }
  0x28   :  { %1143 = vmatpush3.msra.mxu1 %v421_v30  ;;  %1062 = vmatprep.subr.mxu0 %v419_v49 }
  0x29   :  { %1128 = vmatprep.subr.mxu1 %v420_v48  ;;  %1063 = vmatpush3.msra.mxu0 %v419_v49 }
  0x2a   :  { %1013 = vmatmul.mubr.msk.f32.gmra.mxu0 %vm63_vm0, %v37_v33  ;;  %1144 = vmatpush3.msra.mxu1 %v420_v48 }
  0x2b   :  { %1015 = vmatprep.mubr.msk.f32.mxu0 %vm63_vm0, %v38_v34  ;;  %1129 = vmatprep.subr.mxu1 %v419_v49 }
  0x2c   :  { %1145 = vmatpush3.msra.mxu1 %v419_v49  ;;  %1064 = vmatprep.subr.mxu0 %v418_v50 }
  0x2d   :  { %1130 = vmatprep.subr.mxu1 %v418_v50  ;;  %1065 = vmatpush3.msra.mxu0 %v418_v50 }
  0x2e   :  { %1016 = vmatmul.mubr.msk.f32.gmra.mxu0 %vm63_vm0, %v39_v35  ;;  %1146 = vmatpush3.msra.mxu1 %v418_v50 }
  0x2f   :  { %1018 = vmatprep.mubr.msk.f32.mxu0 %vm63_vm0, %v40_v36  ;;  %1066 = vmatprep.subr.mxu0 %v417_v51 }
  0x30   :  { %1131 = vmatprep.subr.mxu1 %v417_v51  ;;  %1067 = vmatpush3.msra.mxu0 %v417_v51 }
  0x31   :  { %1147 = vmatpush3.msra.mxu1 %v417_v51 }
  0x32   :  { %1019 = vmatmul.mubr.msk.f32.gmra.mxu0 %vm63_vm0, %v41_v37 }
  0x33   :  { %1021 = vmatprep.mubr.msk.f32.mxu0 %vm63_vm0, %v42_v38 }
  0x36   :  { %1022 = vmatmul.mubr.msk.f32.gmra.mxu0 %vm63_vm0, %v43_v39 }
  0x37   :  { %1024 = vmatprep.mubr.msk.f32.mxu0 %vm63_vm0, %v44_v40 }
  0x3a   :  { %1025 = vmatmul.mubr.msk.f32.gmra.mxu0 %vm63_vm0, %v45_v41 }
  0x3b   :  { %1027 = vmatprep.mubr.msk.f32.mxu0 %vm63_vm0, %v46_v42 }
  0x3e   :  { %1028 = vmatmul.mubr.msk.f32.gmra.mxu0 %vm63_vm0, %v47_v43 }
  0x3f   :  { %1030 = vmatprep.mubr.msk.f32.mxu0 %vm63_vm0, %v48_v44 }
  0x42   :  { %1031 = vmatmul.mubr.msk.f32.gmra.mxu0 %vm63_vm0, %v49_v45 }
  0x43   :  { %1033 = vmatprep.mubr.msk.f32.mxu0 %vm63_vm0, %v50_v46 }
  0x46   :  { %1034 = vmatmul.mubr.msk.f32.gmra.mxu0 %vm63_vm0, %v51_v47 }
  0xca   :  { %v990_v53 = vpop.f32.mrf.mxu0 }
  0xcb   :  { %v232_v54 = vadd.f32 %v990_v53, %v1497_v52 }
  0xcc   :  { %v226_v55 = vpop.f32.mrf.mxu0 }
  0xcd   :  { %v227_v56 = vadd.f32 %v1497_v52, %v226_v55  ;;  %v386_v59 = vmax.f32 %v232_v54, 0.0 }
  0xce   :  { %v993_v57 = vpop.f32.mrf.mxu0 }
  0xcf   :  { %v385_v58 = vmax.f32 %v227_v56, 0.0  ;;  %v242_v60 = vadd.f32 %v993_v57, %v1497_v52 }
  0xd0   :  { %v236_v61 = vpop.f32.mrf.mxu0 }
  0xd1   :  { %v237_v62 = vadd.f32 %v1497_v52, %v236_v61  ;;  %1068 = vmatprep.mubr.f32.mxu0 %v385_v58  ;;  %v388_v1 = vmax.f32 %v242_v60, 0.0 }
  0xd2   :  { %v996_v63 = vpop.f32.mrf.mxu0  ;;  %1069 = vmatmul.mubr.f32.vlgmr.msra.gmra.mxu0 %v386_v59 }
  0xd3   :  { %v387_v0 = vmax.f32 %v237_v62, 0.0  ;;  %v252_v2 = vadd.f32 %v996_v63, %v1497_v52 }
  0xd4   :  { %v246_v3 = vpop.f32.mrf.mxu0 }
  0xd5   :  { %v247_v4 = vadd.f32 %v1497_v52, %v246_v3  ;;  %1071 = vmatprep.mubr.f32.mxu0 %v387_v0  ;;  %v390_v7 = vmax.f32 %v252_v2, 0.0 }
  0xd6   :  { %v999_v5 = vpop.f32.mrf.mxu0  ;;  %1072 = vmatmul.mubr.f32.gmra.mxu0 %v388_v1 }
  0xd7   :  { %v389_v6 = vmax.f32 %v247_v4, 0.0  ;;  %v262_v8 = vadd.f32 %v999_v5, %v1497_v52 }
  0xd8   :  { %v256_v9 = vpop.f32.mrf.mxu0 }
  0xd9   :  { %1074 = vmatprep.mubr.f32.mxu0 %v389_v6  ;;  %v257_v10 = vadd.f32 %v1497_v52, %v256_v9  ;;  %v392_v13 = vmax.f32 %v262_v8, 0.0 }
  0xda   :  { %v1002_v11 = vpop.f32.mrf.mxu0  ;;  %1075 = vmatmul.mubr.f32.gmra.mxu0 %v390_v7 }
  0xdb   :  { %v391_v12 = vmax.f32 %v257_v10, 0.0  ;;  %v272_v14 = vadd.f32 %v1002_v11, %v1497_v52 }
  0xdc   :  { %v266_v15 = vpop.f32.mrf.mxu0 }
  0xdd   :  { %v267_v16 = vadd.f32 %v1497_v52, %v266_v15  ;;  %1077 = vmatprep.mubr.f32.mxu1 %v391_v12  ;;  %v394_v19 = vmax.f32 %v272_v14, 0.0 }
  0xde   :  { %v1005_v17 = vpop.f32.mrf.mxu0  ;;  %1078 = vmatmul.mubr.f32.vlgmr.msra.gmra.mxu1 %v392_v13 }
  0xdf   :  { %v393_v18 = vmax.f32 %v267_v16, 0.0  ;;  %v282_v20 = vadd.f32 %v1005_v17, %v1497_v52 }
  0xe0   :  { %v276_v21 = vpop.f32.mrf.mxu0 }
  0xe1   :  { %v277_v22 = vadd.f32 %v1497_v52, %v276_v21  ;;  %1080 = vmatprep.mubr.f32.mxu1 %v393_v18  ;;  %v396_v25 = vmax.f32 %v282_v20, 0.0 }
  0xe2   :  { %v1008_v23 = vpop.f32.mrf.mxu0  ;;  %1081 = vmatmul.mubr.f32.gmra.mxu1 %v394_v19 }
  0xe3   :  { %v395_v24 = vmax.f32 %v277_v22, 0.0  ;;  %v292_v26 = vadd.f32 %v1008_v23, %v1497_v52  ;;  %v1534_v22 = vld [vmem:[%s1700_s4] ss:$0 sm:$0xff] }
  0xe4   :  { %v286_v27 = vpop.f32.mrf.mxu0 }
  0xe5   :  { %v287_v28 = vadd.f32 %v1497_v52, %v286_v27  ;;  %1083 = vmatprep.mubr.f32.mxu1 %v395_v24  ;;  %v398_v31 = vmax.f32 %v292_v26, 0.0 }
  0xe6   :  { %v1011_v29 = vpop.f32.mrf.mxu0  ;;  %1084 = vmatmul.mubr.f32.gmra.mxu1 %v396_v25 }
  0xe7   :  { %v397_v30 = vmax.f32 %v287_v28, 0.0  ;;  %v302_v32 = vadd.f32 %v1011_v29, %v1497_v52 }
  0xe8   :  { %v296_v33 = vpop.f32.mrf.mxu0 }
  0xe9   :  { %v297_v34 = vadd.f32 %v1497_v52, %v296_v33  ;;  %1086 = vmatprep.mubr.f32.mxu1 %v397_v30  ;;  %v400_v37 = vmax.f32 %v302_v32, 0.0 }
  0xea   :  { %v1014_v35 = vpop.f32.mrf.mxu0  ;;  %1087 = vmatmul.mubr.f32.gmra.mxu1 %v398_v31 }
  0xeb   :  { %v399_v36 = vmax.f32 %v297_v34, 0.0  ;;  %v312_v38 = vadd.f32 %v1014_v35, %v1497_v52 }
  0xec   :  { %v306_v39 = vpop.f32.mrf.mxu0 }
  0xed   :  { %v307_v40 = vadd.f32 %v1497_v52, %v306_v39  ;;  %1089 = vmatprep.mubr.f32.mxu1 %v399_v36  ;;  %v402_v43 = vmax.f32 %v312_v38, 0.0 }
  0xee   :  { %v1017_v41 = vpop.f32.mrf.mxu0  ;;  %1090 = vmatmul.mubr.f32.gmra.mxu1 %v400_v37 }
  0xef   :  { %v401_v42 = vmax.f32 %v307_v40, 0.0  ;;  %v322_v44 = vadd.f32 %v1017_v41, %v1497_v52 }
  0xf0   :  { %v316_v45 = vpop.f32.mrf.mxu0 }
  0xf1   :  { %v317_v46 = vadd.f32 %v1497_v52, %v316_v45  ;;  %1092 = vmatprep.mubr.f32.mxu1 %v401_v42  ;;  %v404_v49 = vmax.f32 %v322_v44, 0.0 }
  0xf2   :  { %v1020_v47 = vpop.f32.mrf.mxu0  ;;  %1093 = vmatmul.mubr.f32.gmra.mxu1 %v402_v43 }
  0xf3   :  { %v403_v48 = vmax.f32 %v317_v46, 0.0  ;;  %v332_v50 = vadd.f32 %v1020_v47, %v1497_v52 }
  0xf4   :  { %v326_v51 = vpop.f32.mrf.mxu0 }
  0xf5   :  { %v327_v53 = vadd.f32 %v1497_v52, %v326_v51  ;;  %1095 = vmatprep.mubr.f32.mxu1 %v403_v48  ;;  %v406_v56 = vmax.f32 %v332_v50, 0.0 }
  0xf6   :  { %v1023_v54 = vpop.f32.mrf.mxu0  ;;  %1096 = vmatmul.mubr.f32.gmra.mxu1 %v404_v49 }
  0xf7   :  { %v405_v55 = vmax.f32 %v327_v53, 0.0  ;;  %v342_v57 = vadd.f32 %v1023_v54, %v1497_v52 }
  0xf8   :  { %v336_v58 = vpop.f32.mrf.mxu0 }
  0xf9   :  { %v337_v59 = vadd.f32 %v1497_v52, %v336_v58  ;;  %1098 = vmatprep.mubr.f32.mxu1 %v405_v55  ;;  %v408_v62 = vmax.f32 %v342_v57, 0.0 }
  0xfa   :  { %v1026_v60 = vpop.f32.mrf.mxu0  ;;  %1099 = vmatmul.mubr.f32.gmra.mxu1 %v406_v56 }
  0xfb   :  { %v407_v61 = vmax.f32 %v337_v59, 0.0  ;;  %v352_v63 = vadd.f32 %v1026_v60, %v1497_v52 }
  0xfc   :  { %v346_v0 = vpop.f32.mrf.mxu0 }
  0xfd   :  { %v347_v1 = vadd.f32 %v1497_v52, %v346_v0  ;;  %1101 = vmatprep.mubr.f32.mxu1 %v407_v61  ;;  %v410_v4 = vmax.f32 %v352_v63, 0.0 }
  0xfe   :  { %v1029_v2 = vpop.f32.mrf.mxu0  ;;  %1102 = vmatmul.mubr.f32.gmra.mxu1 %v408_v62 }
  0xff   :  { %v409_v3 = vmax.f32 %v347_v1, 0.0  ;;  %v362_v5 = vadd.f32 %v1029_v2, %v1497_v52 }
 0x100   :  { %v356_v6 = vpop.f32.mrf.mxu0 }
 0x101   :  { %v357_v7 = vadd.f32 %v1497_v52, %v356_v6  ;;  %1104 = vmatprep.mubr.f32.mxu1 %v409_v3  ;;  %v412_v10 = vmax.f32 %v362_v5, 0.0 }
 0x102   :  { %v1032_v8 = vpop.f32.mrf.mxu0  ;;  %1105 = vmatmul.mubr.f32.gmra.mxu1 %v410_v4 }
 0x103   :  { %v411_v9 = vmax.f32 %v357_v7, 0.0  ;;  %v372_v11 = vadd.f32 %v1032_v8, %v1497_v52 }
 0x104   :  { %v366_v12 = vpop.f32.mrf.mxu0 }
 0x105   :  { %v367_v13 = vadd.f32 %v1497_v52, %v366_v12  ;;  %1107 = vmatprep.mubr.f32.mxu1 %v411_v9  ;;  %v414_v16 = vmax.f32 %v372_v11, 0.0 }
 0x106   :  { %v1035_v14 = vpop.f32.mrf.mxu0  ;;  %1108 = vmatmul.mubr.f32.gmra.mxu1 %v412_v10 }
 0x107   :  { %v413_v15 = vmax.f32 %v367_v13, 0.0  ;;  %v382_v17 = vadd.f32 %v1035_v14, %v1497_v52 }
 0x108   :  { %v376_v18 = vpop.f32.mrf.mxu0 }
 0x109   :  { %v377_v19 = vadd.f32 %v1497_v52, %v376_v18  ;;  %1110 = vmatprep.mubr.f32.mxu1 %v413_v15  ;;  %v416_v21 = vmax.f32 %v382_v17, 0.0 }
 0x10a   :  { %1111 = vmatmul.mubr.f32.gmra.mxu1 %v414_v16 }
 0x10b   :  { %v415_v20 = vmax.f32 %v377_v19, 0.0 }
 0x10d   :  { %1113 = vmatprep.mubr.f32.mxu1 %v415_v20 }
 0x10e   :  { %1114 = vmatmul.mubr.f32.gmra.mxu1 %v416_v21 }
 0x192   :  { %v1070_v23 = vpop.f32.mrf.mxu0 }
 0x193   :  { %v512_v24 = vadd.f32 %v1070_v23, %v1534_v22 }
 0x194   :  { %v506_v25 = vpop.f32.mrf.mxu0 }
 0x195   :  { %v666_v26 = vsub.f32 0.0, %v512_v24  ;;  %v507_v27 = vadd.f32 %v1534_v22, %v506_v25 }
 0x196   :  { %v1073_v28 = vpop.f32.mrf.mxu0 }
 0x197   :  { %v699_v52 = vmul.f32 1.442695, %v666_v26  ;;  %v665_v29 = vsub.f32 0.0, %v507_v27  ;;  %v522_v30 = vadd.f32 %v1073_v28, %v1534_v22 }
 0x198   :  { %v516_v31 = vpop.f32.mrf.mxu0 }
 0x199   :  { %1148 = vpow2.f32 %v699_v52  ;;  %v697_v32 = vmul.f32 1.442695, %v665_v29  ;;  %v668_v33 = vsub.f32 0.0, %v522_v30  ;;  %v517_v34 = vadd.f32 %v1534_v22, %v516_v31 }
 0x19a   :  { %v1076_v35 = vpop.f32.mrf.mxu0 }
 0x19b   :  { %1150 = vpow2.f32 %v697_v32  ;;  %v703_v36 = vmul.f32 1.442695, %v668_v33  ;;  %v667_v37 = vsub.f32 0.0, %v517_v34  ;;  %v532_v38 = vadd.f32 %v1076_v35, %v1534_v22 }
 0x19c   :  { %v526_v39 = vpop.f32.mrf.mxu0 }
 0x19d   :  { %1152 = vpow2.f32 %v703_v36  ;;  %v701_v40 = vmul.f32 1.442695, %v667_v37  ;;  %v670_v41 = vsub.f32 0.0, %v532_v38  ;;  %v527_v42 = vadd.f32 %v1534_v22, %v526_v39 }
 0x19e   :  { %v1079_v43 = vpop.f32.mrf.mxu1 }
 0x19f   :  { %1154 = vpow2.f32 %v701_v40  ;;  %v707_v44 = vmul.f32 1.442695, %v670_v41  ;;  %v669_v45 = vsub.f32 0.0, %v527_v42  ;;  %v542_v46 = vadd.f32 %v1079_v43, %v1534_v22 }
 0x1a0   :  { %v536_v47 = vpop.f32.mrf.mxu1 }
 0x1a1   :  { %1156 = vpow2.f32 %v707_v44  ;;  %v705_v48 = vmul.f32 1.442695, %v669_v45  ;;  %v672_v49 = vsub.f32 0.0, %v542_v46  ;;  %v537_v50 = vadd.f32 %v1534_v22, %v536_v47 }
 0x1a2   :  { %v1082_v51 = vpop.f32.mrf.mxu1 }
 0x1a3   :  { %1158 = vpow2.f32 %v705_v48  ;;  %v711_v53 = vmul.f32 1.442695, %v672_v49  ;;  %v671_v54 = vsub.f32 0.0, %v537_v50  ;;  %v552_v55 = vadd.f32 %v1082_v51, %v1534_v22 }
 0x1a4   :  { %v546_v56 = vpop.f32.mrf.mxu1 }
 0x1a5   :  { %1160 = vpow2.f32 %v711_v53  ;;  %v709_v57 = vmul.f32 1.442695, %v671_v54  ;;  %v674_v58 = vsub.f32 0.0, %v552_v55  ;;  %v547_v59 = vadd.f32 %v1534_v22, %v546_v56 }
 0x1a6   :  { %v1149_v60 = vpop.eup %1148  ;;  %v1085_v61 = vpop.f32.mrf.mxu1 }
 0x1a7   :  { %v762_v62 = vadd.f32 1.0, %v1149_v60  ;;  %1162 = vpow2.f32 %v709_v57  ;;  %v715_v63 = vmul.f32 1.442695, %v674_v58  ;;  %v673_v0 = vsub.f32 0.0, %v547_v59 }
 0x1a8   :  { %v1151_v1 = vpop.eup %1150  ;;  %v562_v2 = vadd.f32 %v1085_v61, %v1534_v22  ;;  %v556_v3 = vpop.f32.mrf.mxu1 }
 0x1a9   :  { %1164 = vrcp.f32 %v762_v62  ;;  %v761_v4 = vadd.f32 1.0, %v1151_v1  ;;  %v713_v5 = vmul.f32 1.442695, %v673_v0  ;;  %v557_v6 = vadd.f32 %v1534_v22, %v556_v3 }
 0x1aa   :  { %v1153_v7 = vpop.eup %1152  ;;  %1166 = vpow2.f32 %v715_v63  ;;  %v676_v8 = vsub.f32 0.0, %v562_v2  ;;  %v1088_v9 = vpop.f32.mrf.mxu1 }
 0x1ab   :  { %1168 = vrcp.f32 %v761_v4  ;;  %v764_v10 = vadd.f32 1.0, %v1153_v7  ;;  %v675_v11 = vsub.f32 0.0, %v557_v6  ;;  %v572_v12 = vadd.f32 %v1088_v9, %v1534_v22 }
 0x1ac   :  { %v1155_v13 = vpop.eup %1154  ;;  %1170 = vpow2.f32 %v713_v5  ;;  %v719_v14 = vmul.f32 1.442695, %v676_v8  ;;  %v566_v15 = vpop.f32.mrf.mxu1 }
 0x1ad   :  { %1172 = vrcp.f32 %v764_v10  ;;  %v763_v16 = vadd.f32 1.0, %v1155_v13  ;;  %v717_v17 = vmul.f32 1.442695, %v675_v11  ;;  %v678_v18 = vsub.f32 0.0, %v572_v12 }
 0x1ae   :  { %v1157_v19 = vpop.eup %1156  ;;  %1174 = vpow2.f32 %v719_v14  ;;  %v567_v20 = vadd.f32 %v1534_v22, %v566_v15  ;;  %v1091_v21 = vpop.f32.mrf.mxu1 }
 0x1af   :  { %1176 = vrcp.f32 %v763_v16  ;;  %v766_v23 = vadd.f32 1.0, %v1157_v19  ;;  %v723_v24 = vmul.f32 1.442695, %v678_v18  ;;  %v582_v25 = vadd.f32 %v1091_v21, %v1534_v22 }
 0x1b0   :  { %v1159_v26 = vpop.eup %1158  ;;  %1178 = vpow2.f32 %v717_v17  ;;  %v677_v27 = vsub.f32 0.0, %v567_v20  ;;  %v576_v28 = vpop.f32.mrf.mxu1 }
 0x1b1   :  { %1180 = vrcp.f32 %v766_v23  ;;  %v765_v52 = vadd.f32 1.0, %v1159_v26  ;;  %v680_v29 = vsub.f32 0.0, %v582_v25  ;;  %v577_v30 = vadd.f32 %v1534_v22, %v576_v28 }
 0x1b2   :  { %v1161_v31 = vpop.eup %1160  ;;  %1182 = vpow2.f32 %v723_v24  ;;  %v721_v32 = vmul.f32 1.442695, %v677_v27  ;;  %v1094_v33 = vpop.f32.mrf.mxu1 }
 0x1b3   :  { %1184 = vrcp.f32 %v765_v52  ;;  %v768_v34 = vadd.f32 1.0, %v1161_v31  ;;  %v727_v35 = vmul.f32 1.442695, %v680_v29  ;;  %v679_v36 = vsub.f32 0.0, %v577_v30 }
 0x1b4   :  { %v1163_v37 = vpop.eup %1162  ;;  %1186 = vpow2.f32 %v721_v32  ;;  %v592_v38 = vadd.f32 %v1094_v33, %v1534_v22  ;;  %v586_v39 = vpop.f32.mrf.mxu1 }
 0x1b5   :  { %1188 = vrcp.f32 %v768_v34  ;;  %v767_v40 = vadd.f32 1.0, %v1163_v37  ;;  %v725_v41 = vmul.f32 1.442695, %v679_v36  ;;  %v587_v42 = vadd.f32 %v1534_v22, %v586_v39 }
 0x1b6   :  { %v1165_v43 = vpop.eup %1164  ;;  %1190 = vpow2.f32 %v727_v35  ;;  %v682_v44 = vsub.f32 0.0, %v592_v38  ;;  %v1097_v45 = vpop.f32.mrf.mxu1 }
 0x1b7   :  { %v1167_v46 = vpop.eup %1166  ;;  %827 = vst.msk [vmem:[%s1701_s5 + $0x8] sm:$0xff] %vm825_vm1, %v1165_v43  ;;  %1192 = vrcp.f32 %v767_v40  ;;  %v681_v47 = vsub.f32 0.0, %v587_v42  ;;  %v602_v48 = vadd.f32 %v1097_v45, %v1534_v22 }
 0x1b8   :  { %v1169_v49 = vpop.eup %1168  ;;  %v770_v50 = vadd.f32 1.0, %v1167_v46  ;;  %1194 = vpow2.f32 %v725_v41  ;;  %v731_v51 = vmul.f32 1.442695, %v682_v44  ;;  %v596_v53 = vpop.f32.mrf.mxu1 }
 0x1b9   :  { %v1171_v54 = vpop.eup %1170  ;;  %826 = vst.msk [vmem:[%s1701_s5] sm:$0xff] %vm825_vm1, %v1169_v49  ;;  %v729_v55 = vmul.f32 1.442695, %v681_v47  ;;  %v684_v56 = vsub.f32 0.0, %v602_v48  ;;  %v597_v57 = vadd.f32 %v1534_v22, %v596_v53 }
 0x1ba   :  { %v1173_v58 = vpop.eup %1172  ;;  %1196 = vrcp.f32 %v770_v50  ;;  %v769_v59 = vadd.f32 1.0, %v1171_v54  ;;  %v1100_v60 = vpop.f32.mrf.mxu1 }
 0x1bb   :  { %v1175_v61 = vpop.eup %1174  ;;  %829 = vst.msk [vmem:[%s1701_s5 + $0x18] sm:$0xff] %vm825_vm1, %v1173_v58  ;;  %1198 = vpow2.f32 %v731_v51  ;;  %v735_v62 = vmul.f32 1.442695, %v684_v56  ;;  %v683_v63 = vsub.f32 0.0, %v597_v57  ;;  %v612_v0 = vadd.f32 %v1100_v60, %v1534_v22 }
 0x1bc   :  { %v1177_v1 = vpop.eup %1176  ;;  %1200 = vrcp.f32 %v769_v59  ;;  %v772_v2 = vadd.f32 1.0, %v1175_v61  ;;  %v606_v3 = vpop.f32.mrf.mxu1 }
 0x1bd   :  { %v1179_v4 = vpop.eup %1178  ;;  %828 = vst.msk [vmem:[%s1701_s5 + $0x10] sm:$0xff] %vm825_vm1, %v1177_v1  ;;  %1202 = vpow2.f32 %v729_v55  ;;  %v733_v5 = vmul.f32 1.442695, %v683_v63  ;;  %v686_v6 = vsub.f32 0.0, %v612_v0  ;;  %v607_v7 = vadd.f32 %v1534_v22, %v606_v3 }
 0x1be   :  { %v1181_v8 = vpop.eup %1180  ;;  %1204 = vrcp.f32 %v772_v2  ;;  %v771_v9 = vadd.f32 1.0, %v1179_v4  ;;  %v1103_v10 = vpop.f32.mrf.mxu1 }
 0x1bf   :  { %v1183_v11 = vpop.eup %1182  ;;  %831 = vst.msk [vmem:[%s1701_s5 + $0x28] sm:$0xff] %vm825_vm1, %v1181_v8  ;;  %1206 = vpow2.f32 %v735_v62  ;;  %v739_v12 = vmul.f32 1.442695, %v686_v6  ;;  %v685_v13 = vsub.f32 0.0, %v607_v7  ;;  %v622_v14 = vadd.f32 %v1103_v10, %v1534_v22 }
 0x1c0   :  { %v1185_v15 = vpop.eup %1184  ;;  %1208 = vrcp.f32 %v771_v9  ;;  %v774_v16 = vadd.f32 1.0, %v1183_v11  ;;  %v616_v17 = vpop.f32.mrf.mxu1 }
 0x1c1   :  { %v1187_v18 = vpop.eup %1186  ;;  %830 = vst.msk [vmem:[%s1701_s5 + $0x20] sm:$0xff] %vm825_vm1, %v1185_v15  ;;  %1210 = vpow2.f32 %v733_v5  ;;  %v737_v19 = vmul.f32 1.442695, %v685_v13  ;;  %v688_v20 = vsub.f32 0.0, %v622_v14  ;;  %v617_v21 = vadd.f32 %v1534_v22, %v616_v17 }
 0x1c2   :  { %v1189_v23 = vpop.eup %1188  ;;  %1212 = vrcp.f32 %v774_v16  ;;  %v773_v24 = vadd.f32 1.0, %v1187_v18  ;;  %v1106_v25 = vpop.f32.mrf.mxu1 }
 0x1c3   :  { %v1191_v26 = vpop.eup %1190  ;;  %833 = vst.msk [vmem:[%s1701_s5 + $0x38] sm:$0xff] %vm825_vm1, %v1189_v23  ;;  %1214 = vpow2.f32 %v739_v12  ;;  %v743_v27 = vmul.f32 1.442695, %v688_v20  ;;  %v687_v28 = vsub.f32 0.0, %v617_v21  ;;  %v632_v52 = vadd.f32 %v1106_v25, %v1534_v22 }
 0x1c4   :  { %v1193_v29 = vpop.eup %1192  ;;  %1216 = vrcp.f32 %v773_v24  ;;  %v776_v30 = vadd.f32 1.0, %v1191_v26  ;;  %v626_v31 = vpop.f32.mrf.mxu1 }
 0x1c5   :  { %v1195_v32 = vpop.eup %1194  ;;  %832 = vst.msk [vmem:[%s1701_s5 + $0x30] sm:$0xff] %vm825_vm1, %v1193_v29  ;;  %1218 = vpow2.f32 %v737_v19  ;;  %v741_v33 = vmul.f32 1.442695, %v687_v28  ;;  %v690_v34 = vsub.f32 0.0, %v632_v52  ;;  %v627_v35 = vadd.f32 %v1534_v22, %v626_v31 }
 0x1c6   :  { %1220 = vrcp.f32 %v776_v30  ;;  %v775_v36 = vadd.f32 1.0, %v1195_v32  ;;  %v1109_v37 = vpop.f32.mrf.mxu1 }
 0x1c7   :  { %v1197_v38 = vpop.eup %1196  ;;  %1222 = vpow2.f32 %v743_v27  ;;  %v747_v39 = vmul.f32 1.442695, %v690_v34  ;;  %v689_v40 = vsub.f32 0.0, %v627_v35  ;;  %v642_v41 = vadd.f32 %v1109_v37, %v1534_v22 }
 0x1c8   :  { %v1199_v42 = vpop.eup %1198  ;;  %835 = vst.msk [vmem:[%s1701_s5 + $0x48] sm:$0xff] %vm825_vm1, %v1197_v38  ;;  %1224 = vrcp.f32 %v775_v36  ;;  %v636_v43 = vpop.f32.mrf.mxu1 }
 0x1c9   :  { %v1201_v44 = vpop.eup %1200  ;;  %v778_v45 = vadd.f32 1.0, %v1199_v42  ;;  %1226 = vpow2.f32 %v741_v33  ;;  %v745_v46 = vmul.f32 1.442695, %v689_v40  ;;  %v692_v47 = vsub.f32 0.0, %v642_v41 }
 0x1ca   :  { %v1203_v48 = vpop.eup %1202  ;;  %834 = vst.msk [vmem:[%s1701_s5 + $0x40] sm:$0xff] %vm825_vm1, %v1201_v44  ;;  %1228 = vpow2.f32 %v747_v39  ;;  %v637_v49 = vadd.f32 %v1534_v22, %v636_v43  ;;  %v1112_v50 = vpop.f32.mrf.mxu1 }
 0x1cb   :  { %v1205_v51 = vpop.eup %1204  ;;  %1230 = vrcp.f32 %v778_v45  ;;  %v777_v53 = vadd.f32 1.0, %v1203_v48  ;;  %v751_v54 = vmul.f32 1.442695, %v692_v47  ;;  %v652_v55 = vadd.f32 %v1112_v50, %v1534_v22 }
 0x1cc   :  { %v1207_v56 = vpop.eup %1206  ;;  %837 = vst.msk [vmem:[%s1701_s5 + $0x58] sm:$0xff] %vm825_vm1, %v1205_v51  ;;  %1232 = vpow2.f32 %v745_v46  ;;  %v691_v57 = vsub.f32 0.0, %v637_v49  ;;  %v646_v58 = vpop.f32.mrf.mxu1 }
 0x1cd   :  { %v1209_v59 = vpop.eup %1208  ;;  %1234 = vrcp.f32 %v777_v53  ;;  %v780_v60 = vadd.f32 1.0, %v1207_v56  ;;  %v694_v61 = vsub.f32 0.0, %v652_v55  ;;  %v647_v62 = vadd.f32 %v1534_v22, %v646_v58 }
 0x1ce   :  { %v1211_v63 = vpop.eup %1210  ;;  %836 = vst.msk [vmem:[%s1701_s5 + $0x50] sm:$0xff] %vm825_vm1, %v1209_v59  ;;  %1236 = vpow2.f32 %v751_v54  ;;  %v749_v0 = vmul.f32 1.442695, %v691_v57  ;;  %v1115_v1 = vpop.f32.mrf.mxu1 }
 0x1cf   :  { %v1213_v2 = vpop.eup %1212  ;;  %1238 = vrcp.f32 %v780_v60  ;;  %v779_v3 = vadd.f32 1.0, %v1211_v63  ;;  %v755_v4 = vmul.f32 1.442695, %v694_v61  ;;  %v693_v5 = vsub.f32 0.0, %v647_v62 }
 0x1d0   :  { %v1215_v6 = vpop.eup %1214  ;;  %839 = vst.msk [vmem:[%s1701_s5 + $0x68] sm:$0xff] %vm825_vm1, %v1213_v2  ;;  %1240 = vpow2.f32 %v749_v0  ;;  %v662_v7 = vadd.f32 %v1115_v1, %v1534_v22  ;;  %v656_v8 = vpop.f32.mrf.mxu1 }
 0x1d1   :  { %v1217_v9 = vpop.eup %1216  ;;  %1242 = vrcp.f32 %v779_v3  ;;  %v782_v10 = vadd.f32 1.0, %v1215_v6  ;;  %v753_v11 = vmul.f32 1.442695, %v693_v5  ;;  %v657_v12 = vadd.f32 %v1534_v22, %v656_v8 }
 0x1d2   :  { %v1219_v13 = vpop.eup %1218  ;;  %838 = vst.msk [vmem:[%s1701_s5 + $0x60] sm:$0xff] %vm825_vm1, %v1217_v9  ;;  %1244 = vpow2.f32 %v755_v4  ;;  %v696_v14 = vsub.f32 0.0, %v662_v7 }
 0x1d3   :  { %v1221_v15 = vpop.eup %1220  ;;  %1246 = vrcp.f32 %v782_v10  ;;  %v781_v16 = vadd.f32 1.0, %v1219_v13  ;;  %v695_v17 = vsub.f32 0.0, %v657_v12 }
 0x1d4   :  { %v1223_v18 = vpop.eup %1222  ;;  %841 = vst.msk [vmem:[%s1701_s5 + $0x78] sm:$0xff] %vm825_vm1, %v1221_v15  ;;  %1248 = vpow2.f32 %v753_v11  ;;  %v759_v22 = vmul.f32 1.442695, %v696_v14 }
 0x1d5   :  { %v1225_v19 = vpop.eup %1224  ;;  %1250 = vrcp.f32 %v781_v16  ;;  %v784_v20 = vadd.f32 1.0, %v1223_v18  ;;  %v757_v21 = vmul.f32 1.442695, %v695_v17 }
 0x1d6   :  { %v1227_v23 = vpop.eup %1226  ;;  %840 = vst.msk [vmem:[%s1701_s5 + $0x70] sm:$0xff] %vm825_vm1, %v1225_v19  ;;  %1252 = vpow2.f32 %v759_v22 }
 0x1d7   :  { %v1229_v24 = vpop.eup %1228  ;;  %1254 = vrcp.f32 %v784_v20  ;;  %v783_v25 = vadd.f32 1.0, %v1227_v23 }
 0x1d8   :  { %v1231_v26 = vpop.eup %1230  ;;  %v786_v27 = vadd.f32 1.0, %v1229_v24  ;;  %1256 = vpow2.f32 %v757_v21 }
 0x1d9   :  { %v1233_v28 = vpop.eup %1232  ;;  %843 = vst.msk [vmem:[%s1701_s5 + $0x88] sm:$0xff] %vm825_vm1, %v1231_v26  ;;  %1258 = vrcp.f32 %v783_v25 }
 0x1da   :  { %v1235_v52 = vpop.eup %1234  ;;  %1260 = vrcp.f32 %v786_v27  ;;  %v785_v29 = vadd.f32 1.0, %v1233_v28 }
 0x1db   :  { %v1237_v30 = vpop.eup %1236  ;;  %842 = vst.msk [vmem:[%s1701_s5 + $0x80] sm:$0xff] %vm825_vm1, %v1235_v52 }
 0x1dc   :  { %v1239_v31 = vpop.eup %1238  ;;  %1262 = vrcp.f32 %v785_v29  ;;  %v788_v32 = vadd.f32 1.0, %v1237_v30 }
 0x1dd   :  { %v1241_v33 = vpop.eup %1240  ;;  %845 = vst.msk [vmem:[%s1701_s5 + $0x98] sm:$0xff] %vm825_vm1, %v1239_v31 }
 0x1de   :  { %v1243_v34 = vpop.eup %1242  ;;  %1264 = vrcp.f32 %v788_v32  ;;  %v787_v35 = vadd.f32 1.0, %v1241_v33 }
 0x1df   :  { %v1245_v36 = vpop.eup %1244  ;;  %844 = vst.msk [vmem:[%s1701_s5 + $0x90] sm:$0xff] %vm825_vm1, %v1243_v34 }
 0x1e0   :  { %v1247_v37 = vpop.eup %1246  ;;  %1266 = vrcp.f32 %v787_v35  ;;  %v790_v38 = vadd.f32 1.0, %v1245_v36 }
 0x1e1   :  { %v1249_v39 = vpop.eup %1248  ;;  %847 = vst.msk [vmem:[%s1701_s5 + $0xa8] sm:$0xff] %vm825_vm1, %v1247_v37 }
 0x1e2   :  { %v1251_v40 = vpop.eup %1250  ;;  %1268 = vrcp.f32 %v790_v38  ;;  %v789_v41 = vadd.f32 1.0, %v1249_v39 }
 0x1e3   :  { %v1253_v42 = vpop.eup %1252  ;;  %846 = vst.msk [vmem:[%s1701_s5 + $0xa0] sm:$0xff] %vm825_vm1, %v1251_v40 }
 0x1e4   :  { %v1255_v43 = vpop.eup %1254  ;;  %1270 = vrcp.f32 %v789_v41  ;;  %v792_v44 = vadd.f32 1.0, %v1253_v42 }
 0x1e5   :  { %v1257_v45 = vpop.eup %1256  ;;  %849 = vst.msk [vmem:[%s1701_s5 + $0xb8] sm:$0xff] %vm825_vm1, %v1255_v43 }
 0x1e6   :  { %v1259_v46 = vpop.eup %1258  ;;  %1272 = vrcp.f32 %v792_v44  ;;  %v791_v47 = vadd.f32 1.0, %v1257_v45 }
 0x1e7   :  { %v1261_v48 = vpop.eup %1260  ;;  %848 = vst.msk [vmem:[%s1701_s5 + $0xb0] sm:$0xff] %vm825_vm1, %v1259_v46 }
 0x1e8   :  { %851 = vst.msk [vmem:[%s1701_s5 + $0xc8] sm:$0xff] %vm825_vm1, %v1261_v48  ;;  %1274 = vrcp.f32 %v791_v47 }
 0x1e9   :  { %v1263_v49 = vpop.eup %1262 }
 0x1ea   :  { %850 = vst.msk [vmem:[%s1701_s5 + $0xc0] sm:$0xff] %vm825_vm1, %v1263_v49 }
 0x1eb   :  { %v1265_v50 = vpop.eup %1264 }
 0x1ec   :  { %853 = vst.msk [vmem:[%s1701_s5 + $0xd8] sm:$0xff] %vm825_vm1, %v1265_v50 }
 0x1ed   :  { %v1267_v51 = vpop.eup %1266 }
 0x1ee   :  { %852 = vst.msk [vmem:[%s1701_s5 + $0xd0] sm:$0xff] %vm825_vm1, %v1267_v51 }
 0x1ef   :  { %v1269_v53 = vpop.eup %1268 }
 0x1f0   :  { %855 = vst.msk [vmem:[%s1701_s5 + $0xe8] sm:$0xff] %vm825_vm1, %v1269_v53 }
 0x1f1   :  { %v1271_v54 = vpop.eup %1270 }
 0x1f2   :  { %854 = vst.msk [vmem:[%s1701_s5 + $0xe0] sm:$0xff] %vm825_vm1, %v1271_v54 }
 0x1f3   :  { %v1273_v55 = vpop.eup %1272 }
 0x1f4   :  { %857 = vst.msk [vmem:[%s1701_s5 + $0xf8] sm:$0xff] %vm825_vm1, %v1273_v55 }
 0x1f5   :  { %v1275_v56 = vpop.eup %1274 }
 0x1f6   :  { %856 = vst.msk [vmem:[%s1701_s5 + $0xf0] sm:$0xff] %vm825_vm1, %v1275_v56 }

</bundles_post_ra>
